<compile_context>
chip_gen: v6e
topology: v6e:2x2x1
jax: 0.10.0
libtpu: 0.0.40
codegen_flags: <defaults>
</compile_context>

<pallas_src>
import functools

import jax
import jax.numpy as jnp
from jax.experimental import pallas as pl
from jax.experimental.pallas import tpu as pltpu


LANE = 128      # lane width / MXU alignment
SUBLANE = 8     # f32 sublane height


def _round_up(x, m):
    return (x + m - 1) // m * m


def _vmem_capacity_bytes():
    """Per-generation VMEM capacity (64 MiB v7x, 128 MiB v5e/v6e), conservative fallback."""
    try:
        cap = int(pltpu.get_tpu_info().vmem_capacity_bytes)
        return max(32 * 2**20, min(cap, 128 * 2**20))
    except Exception:
        return 64 * 2**20   # conservative (v7x per-TC)


def _resident_spec(shape):
    """Whole-array, grid-constant block; single-buffered since it is DMA'd once."""
    idx = lambda i: (0,) * len(shape)
    try:
        return pl.BlockSpec(shape, idx, pipeline_mode=pl.Buffered(1))
    except TypeError:
        # pipeline_mode not available in this jax version; fall back to default buffering.
        return pl.BlockSpec(shape, idx)


def _pick_tile_b(batch, f_pad, max_width, c_pad, resident_bytes, vmem_cap):
    """Largest batch tile (multiple of 256) that fits VMEM left after resident params."""
    if batch <= 256:
        return _round_up(max(batch, SUBLANE), SUBLANE)
    # Per-row bytes: double-buffered bf16 input tile, double-buffered f32 output tile,
    # live f32 accumulator + bf16 activation at the widest layer.
    per_row = 2 * f_pad * 2 + 2 * c_pad * 4 + max_width * (4 + 2)
    avail = max(vmem_cap - resident_bytes - (12 << 20), 4 << 20)
    t = int(avail // max(per_row, 1))
    t = max(256, min(1024, (t // 256) * 256))
    return min(t, _round_up(batch, 256))


# ----------------------------------------------------------------------------- kernels


def make_resident_kernel(num_layers):
    """All weights VMEM-resident. refs = (x, w0, b0, ..., wL, bL, out)."""
    num_linears = num_layers + 1

    def kernel(*refs):
        x_ref = refs[0]
        out_ref = refs[-1]
        p = refs[1:-1]

        h = x_ref[...]                                   # bf16 [tile_b, f_pad]
        for i in range(num_linears):
            w = p[2 * i][...]                            # bf16 [in_pad, out_pad] (resident)
            b = p[2 * i + 1][...]                        # f32  [1, out_pad]
            acc = jnp.dot(h, w, preferred_element_type=jnp.float32) + b   # f32 epilogue
            if i < num_layers - 1:                       # ReLU after hidden linears 0..L-2
                acc = jnp.maximum(acc, 0.0)
            # bf16 handoff between layers (next dot casts to bf16 anyway); keep f32 at the end.
            h = acc.astype(jnp.bfloat16) if i + 1 < num_linears else acc
        out_ref[...] = h.astype(out_ref.dtype)           # lane-dense padded store

    return kernel


def make_streaming_kernel(num_layers, wshapes):
    """Weights stay in HBM; per-layer manual double-buffered DMA into VMEM scratch.

    refs = (x, w0_hbm..wL_hbm, b0..bL, out, wbuf, wsem)
    """
    num_linears = num_layers + 1

    def kernel(*refs):
        x_ref = refs[0]
        w_refs = refs[1:1 + num_linears]                       # HBM (pl.ANY), bf16 padded
        b_refs = refs[1 + num_linears:1 + 2 * num_linears]     # VMEM resident, f32
        out_ref = refs[1 + 2 * num_linears]
        wbuf = refs[2 + 2 * num_linears]                       # VMEM (2, max_in, max_out) bf16
        wsem = refs[3 + 2 * num_linears]                       # DMA sems (2,)

        def wcopy(i, slot):
            d_in, d_out = wshapes[i]
            return pltpu.make_async_copy(
                w_refs[i], wbuf.at[slot, :d_in, :d_out], wsem.at[slot])

        wcopy(0, 0).start()
        h = x_ref[...]                                          # bf16
        for i in range(num_linears):
            slot = i & 1
            wcopy(i, slot).wait()
            if i + 1 < num_linears:
                wcopy(i + 1, 1 - slot).start()                  # prefetch next layer's weights
            d_in, d_out = wshapes[i]
            w = wbuf[slot, :d_in, :d_out]
            acc = jnp.dot(h, w, preferred_element_type=jnp.float32) + b_refs[i][...]
            if i < num_layers - 1:
                acc = jnp.maximum(acc, 0.0)
            h = acc.astype(jnp.bfloat16) if i + 1 < num_linears else acc
        out_ref[...] = h.astype(out_ref.dtype)

    return kernel


# ----------------------------------------------------------------------------- wrapper


def prepare_block_model_params(params):
    """One-time padding/casting of raw f32 params -> lane-padded bf16 weights / f32 biases.

    Hoisted out of the per-call forward so each jitted forward does not re-pad / re-cast
    the full parameter set.
    """
    padded = []
    for i in range(len(params) // 2):
        w, b = params[2 * i], params[2 * i + 1]
        d_in, d_out = w.shape
        in_p, out_p = _round_up(d_in, LANE), _round_up(d_out, LANE)
        w_p = jnp.zeros((in_p, out_p), jnp.bfloat16)
        w_p = w_p.at[:d_in, :d_out].set(w.astype(jnp.bfloat16))
        b_p = jnp.zeros((1, out_p), jnp.float32)
        b_p = b_p.at[:, :d_out].set(b.reshape(1, d_out).astype(jnp.float32))
        padded.extend([w_p, b_p])
    return padded


def block_model_forward(x, padded_params, num_layers, num_classes,
                        tile_b=None, out_dtype=jnp.float32):
    """x: [batch, num_features] f32. padded_params: from prepare_block_model_params."""
    batch, num_features = x.shape
    num_linears = num_layers + 1

    f_pad = padded_params[0].shape[0]
    c_pad = padded_params[2 * num_linears - 1].shape[1]
    out_itemsize = jnp.dtype(out_dtype).itemsize

    cap = _vmem_capacity_bytes()

    # Resident-parameter footprint with Buffered(1) (single copy); (1, out_pad) biases
    # occupy a full 8-sublane tile in VMEM.
    w_bytes = sum(int(padded_params[2 * i].size) * 2 for i in range(num_linears))
    b_bytes = sum(8 * padded_params[2 * i + 1].shape[1] * 4 for i in range(num_linears))
    param_bytes = w_bytes + b_bytes

    max_in = max(padded_params[2 * i].shape[0] for i in range(num_linears))
    max_out = max(padded_params[2 * i].shape[1] for i in range(num_linears))
    max_width = max(f_pad, c_pad, max_out)

    stream_weights = param_bytes > int(0.45 * cap)

    if stream_weights:
        # biases resident + 2-slot bf16 weight scratch
        resident_bytes = b_bytes + 2 * max_in * max_out * 2
    else:
        resident_bytes = param_bytes

    if tile_b is None:
        tile_b = _pick_tile_b(batch, f_pad, max_width, c_pad, resident_bytes, cap)
    b_pad = _round_up(batch, tile_b)

    # Pad input to bf16 batch tiles (lane- and sublane-aligned).
    x_p = jnp.zeros((b_pad, f_pad), jnp.bfloat16)
    x_p = x_p.at[:batch, :num_features].set(x.astype(jnp.bfloat16))

    grid = (b_pad // tile_b,)

    # VMEM budget: resident params x1, streamed x/out tiles x2 buffers, live acts (f32+bf16).
    act_bytes = 2 * tile_b * f_pad * 2 + 2 * tile_b * c_pad * out_itemsize
    live_bytes = tile_b * max_width * (4 + 2)
    needed = resident_bytes + act_bytes + live_bytes
    vmem_limit = int(min(cap - (8 << 20), max(int(needed * 1.3) + (2 << 20), 32 << 20)))

    x_spec = pl.BlockSpec((tile_b, f_pad), lambda i: (i, 0))
    out_spec = pl.BlockSpec((tile_b, c_pad), lambda i: (i, 0))
    compiler_params = pltpu.CompilerParams(
        dimension_semantics=("parallel",),
        vmem_limit_bytes=vmem_limit)

    if not stream_weights:
        in_specs = [x_spec] + [_resident_spec(p.shape) for p in padded_params]
        out_p = pl.pallas_call(
            make_resident_kernel(num_layers),
            out_shape=jax.ShapeDtypeStruct((b_pad, c_pad), out_dtype),
            grid=grid,
            in_specs=in_specs,
            out_specs=out_spec,
            compiler_params=compiler_params,
        )(x_p, *padded_params)
    else:
        w_list = [padded_params[2 * i] for i in range(num_linears)]
        b_list = [padded_params[2 * i + 1] for i in range(num_linears)]
        wshapes = [tuple(w.shape) for w in w_list]
        in_specs = ([x_spec]
                    + [pl.BlockSpec(memory_space=pl.ANY) for _ in w_list]
                    + [_resident_spec(b.shape) for b in b_list])
        out_p = pl.pallas_call(
            make_streaming_kernel(num_layers, wshapes),
            out_shape=jax.ShapeDtypeStruct((b_pad, c_pad), out_dtype),
            grid=grid,
            in_specs=in_specs,
            out_specs=out_spec,
            scratch_shapes=[
                pltpu.VMEM((2, max_in, max_out), jnp.bfloat16),
                pltpu.SemaphoreType.DMA((2,)),
            ],
            compiler_params=compiler_params,
        )(x_p, *w_list, *b_list)

    return out_p[:batch, :num_classes]


# ----------------------------------------------------------------------------- init / ref


def init_block_model_params(key, num_features, num_classes, num_layers, num_nodes):
    """Deterministic init matching BlockModel.__init__ shapes (PyTorch-style uniform).

    Weights are stored [in_features, out_features] (transpose of PyTorch's [out, in])
    so the kernel computes h @ W + b directly; biases as [1, out_features].
    """
    params = []
    dims_in = [num_features] + [num_nodes] * (num_layers - 1) + [num_nodes]
    dims_out = [num_nodes] * num_layers + [num_classes]
    for d_in, d_out in zip(dims_in, dims_out):
        key, kw, kb = jax.random.split(key, 3)
        bound = 1.0 / jnp.sqrt(jnp.float32(d_in))
        w = jax.random.uniform(kw, (d_in, d_out), jnp.float32, -bound, bound)
        b = jax.random.uniform(kb, (1, d_out), jnp.float32, -bound, bound)
        params.extend([w, b])
    return params


def block_model_reference(x, params, num_layers):
    """Plain-JAX reference mirroring the kernel's bf16-weight / f32-accumulate math."""
    h = x.astype(jnp.float32)
    num_linears = num_layers + 1
    for i in range(num_linears):
        w, b = params[2 * i], params[2 * i + 1]
        h = jnp.dot(h.astype(jnp.bfloat16), w.astype(jnp.bfloat16),
                    preferred_element_type=jnp.float32) + b.astype(jnp.float32)
        if i < num_layers - 1:
            h = jnp.maximum(h, 0.0)
    return h


if __name__ == "__main__":
    # Small synthetic config consistent with the module's constructor.
    batch = 8
    num_features = 16
    num_classes = 8
    num_layers = 3
    num_nodes = 32

    key = jax.random.PRNGKey(0)
    key, kx = jax.random.split(key)
    x = jax.random.normal(kx, (batch, num_features), dtype=jnp.float32)

    params = init_block_model_params(key, num_features, num_classes, num_layers, num_nodes)
    padded_params = prepare_block_model_params(params)   # once, not per forward call

    fwd = jax.jit(
        functools.partial(
            block_model_forward, num_layers=num_layers, num_classes=num_classes
        )
    )
    out = jax.block_until_ready(fwd(x, padded_params))

    ref = block_model_reference(x, params, num_layers)
    assert out.shape == (batch, num_classes)
    assert jnp.allclose(out, ref, atol=5e-3, rtol=5e-3), "mismatch vs JAX reference"

    print("KERNEL_OK")
</pallas_src>

<mosaic_0001>
module attributes {stable_mosaic.version = 11 : i64} {
  func.func @kernel(%arg0: i32, %arg1: memref<8x128xbf16, #tpu.memory_space<vmem>>, %arg2: memref<128x128xbf16, #tpu.memory_space<vmem>>, %arg3: memref<1x128xf32, #tpu.memory_space<vmem>>, %arg4: memref<128x128xbf16, #tpu.memory_space<vmem>>, %arg5: memref<1x128xf32, #tpu.memory_space<vmem>>, %arg6: memref<128x128xbf16, #tpu.memory_space<vmem>>, %arg7: memref<1x128xf32, #tpu.memory_space<vmem>>, %arg8: memref<128x128xbf16, #tpu.memory_space<vmem>>, %arg9: memref<1x128xf32, #tpu.memory_space<vmem>>, %arg10: memref<8x128xf32, #tpu.memory_space<vmem>>) attributes {dimension_semantics = [#tpu.dimension_semantics<parallel>], iteration_bounds = array<i64: 1>, scalar_prefetch = 0 : i64, scratch_operands = 0 : i64, tpu.core_type = #tpu.core_type<tc>, window_params = [{transform_indices = @transform_0, window_bounds = array<i64: 8, 128>}, {pipeline_mode = #tpu.pipeline_mode<synchronous>, transform_indices = @transform_1, window_bounds = array<i64: 128, 128>}, {pipeline_mode = #tpu.pipeline_mode<synchronous>, transform_indices = @transform_2, window_bounds = array<i64: 1, 128>}, {pipeline_mode = #tpu.pipeline_mode<synchronous>, transform_indices = @transform_3, window_bounds = array<i64: 128, 128>}, {pipeline_mode = #tpu.pipeline_mode<synchronous>, transform_indices = @transform_4, window_bounds = array<i64: 1, 128>}, {pipeline_mode = #tpu.pipeline_mode<synchronous>, transform_indices = @transform_5, window_bounds = array<i64: 128, 128>}, {pipeline_mode = #tpu.pipeline_mode<synchronous>, transform_indices = @transform_6, window_bounds = array<i64: 1, 128>}, {pipeline_mode = #tpu.pipeline_mode<synchronous>, transform_indices = @transform_7, window_bounds = array<i64: 128, 128>}, {pipeline_mode = #tpu.pipeline_mode<synchronous>, transform_indices = @transform_8, window_bounds = array<i64: 1, 128>}, {transform_indices = @transform_9, window_bounds = array<i64: 8, 128>}]} {
    %c0 = arith.constant 0 : index
    %c0_0 = arith.constant 0 : index
    %0 = vector.load %arg1[%c0, %c0_0] : memref<8x128xbf16, #tpu.memory_space<vmem>>, vector<8x128xbf16>
    %c0_1 = arith.constant 0 : index
    %c0_2 = arith.constant 0 : index
    %1 = vector.load %arg2[%c0_1, %c0_2] : memref<128x128xbf16, #tpu.memory_space<vmem>>, vector<128x128xbf16>
    %c0_3 = arith.constant 0 : index
    %c0_4 = arith.constant 0 : index
    %2 = vector.load %arg3[%c0_3, %c0_4] : memref<1x128xf32, #tpu.memory_space<vmem>>, vector<1x128xf32>
    %cst = arith.constant dense<0.000000e+00> : vector<8x128xf32>
    %3 = tpu.matmul %0, %1, %cst {dimension_numbers = #tpu.dot_dimension_numbers<[1], [0], [0], [1], [0, 0, 1, 1], [], []>} : vector<8x128xbf16>, vector<128x128xbf16>, vector<8x128xf32> -> vector<8x128xf32>
    %4 = vector.broadcast %2 : vector<1x128xf32> to vector<8x128xf32>
    %5 = arith.addf %3, %4 : vector<8x128xf32>
    %cst_5 = arith.constant 0.000000e+00 : f32
    %6 = vector.broadcast %cst_5 : f32 to vector<8x128xf32>
    %7 = arith.maximumf %5, %6 : vector<8x128xf32>
    %8 = arith.truncf %7 : vector<8x128xf32> to vector<8x128xbf16>
    %c0_6 = arith.constant 0 : index
    %c0_7 = arith.constant 0 : index
    %9 = vector.load %arg4[%c0_6, %c0_7] : memref<128x128xbf16, #tpu.memory_space<vmem>>, vector<128x128xbf16>
    %c0_8 = arith.constant 0 : index
    %c0_9 = arith.constant 0 : index
    %10 = vector.load %arg5[%c0_8, %c0_9] : memref<1x128xf32, #tpu.memory_space<vmem>>, vector<1x128xf32>
    %cst_10 = arith.constant dense<0.000000e+00> : vector<8x128xf32>
    %11 = tpu.matmul %8, %9, %cst_10 {dimension_numbers = #tpu.dot_dimension_numbers<[1], [0], [0], [1], [0, 0, 1, 1], [], []>} : vector<8x128xbf16>, vector<128x128xbf16>, vector<8x128xf32> -> vector<8x128xf32>
    %12 = vector.broadcast %10 : vector<1x128xf32> to vector<8x128xf32>
    %13 = arith.addf %11, %12 : vector<8x128xf32>
    %cst_11 = arith.constant 0.000000e+00 : f32
    %14 = vector.broadcast %cst_11 : f32 to vector<8x128xf32>
    %15 = arith.maximumf %13, %14 : vector<8x128xf32>
    %16 = arith.truncf %15 : vector<8x128xf32> to vector<8x128xbf16>
    %c0_12 = arith.constant 0 : index
    %c0_13 = arith.constant 0 : index
    %17 = vector.load %arg6[%c0_12, %c0_13] : memref<128x128xbf16, #tpu.memory_space<vmem>>, vector<128x128xbf16>
    %c0_14 = arith.constant 0 : index
    %c0_15 = arith.constant 0 : index
    %18 = vector.load %arg7[%c0_14, %c0_15] : memref<1x128xf32, #tpu.memory_space<vmem>>, vector<1x128xf32>
    %cst_16 = arith.constant dense<0.000000e+00> : vector<8x128xf32>
    %19 = tpu.matmul %16, %17, %cst_16 {dimension_numbers = #tpu.dot_dimension_numbers<[1], [0], [0], [1], [0, 0, 1, 1], [], []>} : vector<8x128xbf16>, vector<128x128xbf16>, vector<8x128xf32> -> vector<8x128xf32>
    %20 = vector.broadcast %18 : vector<1x128xf32> to vector<8x128xf32>
    %21 = arith.addf %19, %20 : vector<8x128xf32>
    %22 = arith.truncf %21 : vector<8x128xf32> to vector<8x128xbf16>
    %c0_17 = arith.constant 0 : index
    %c0_18 = arith.constant 0 : index
    %23 = vector.load %arg8[%c0_17, %c0_18] : memref<128x128xbf16, #tpu.memory_space<vmem>>, vector<128x128xbf16>
    %c0_19 = arith.constant 0 : index
    %c0_20 = arith.constant 0 : index
    %24 = vector.load %arg9[%c0_19, %c0_20] : memref<1x128xf32, #tpu.memory_space<vmem>>, vector<1x128xf32>
    %cst_21 = arith.constant dense<0.000000e+00> : vector<8x128xf32>
    %25 = tpu.matmul %22, %23, %cst_21 {dimension_numbers = #tpu.dot_dimension_numbers<[1], [0], [0], [1], [0, 0, 1, 1], [], []>} : vector<8x128xbf16>, vector<128x128xbf16>, vector<8x128xf32> -> vector<8x128xf32>
    %26 = vector.broadcast %24 : vector<1x128xf32> to vector<8x128xf32>
    %27 = arith.addf %25, %26 : vector<8x128xf32>
    %c0_22 = arith.constant 0 : index
    %c0_23 = arith.constant 0 : index
    %28 = vector.load %arg10[%c0_22, %c0_23] : memref<8x128xf32, #tpu.memory_space<vmem>>, vector<8x128xf32>
    tpu.vector_store %arg10[%c0_22, %c0_23], %27 {strides = array<i32>} : memref<8x128xf32, #tpu.memory_space<vmem>>, vector<8x128xf32>,
    return
  }
  func.func @transform_0(%arg0: i32) -> (i32, i32) {
    %c0_i32 = arith.constant 0 : i32
    %c0_i32_0 = arith.constant 0 : i32
    return %arg0, %c0_i32 : i32, i32
  }
  func.func @transform_1(%arg0: i32) -> (i32, i32) {
    %c0_i32 = arith.constant 0 : i32
    %c0_i32_0 = arith.constant 0 : i32
    %c0_i32_1 = arith.constant 0 : i32
    return %c0_i32, %c0_i32_0 : i32, i32
  }
  func.func @transform_2(%arg0: i32) -> (i32, i32) {
    %c0_i32 = arith.constant 0 : i32
    %c0_i32_0 = arith.constant 0 : i32
    %c0_i32_1 = arith.constant 0 : i32
    return %c0_i32, %c0_i32_0 : i32, i32
  }
  func.func @transform_3(%arg0: i32) -> (i32, i32) {
    %c0_i32 = arith.constant 0 : i32
    %c0_i32_0 = arith.constant 0 : i32
    %c0_i32_1 = arith.constant 0 : i32
    return %c0_i32, %c0_i32_0 : i32, i32
  }
  func.func @transform_4(%arg0: i32) -> (i32, i32) {
    %c0_i32 = arith.constant 0 : i32
    %c0_i32_0 = arith.constant 0 : i32
    %c0_i32_1 = arith.constant 0 : i32
    return %c0_i32, %c0_i32_0 : i32, i32
  }
  func.func @transform_5(%arg0: i32) -> (i32, i32) {
    %c0_i32 = arith.constant 0 : i32
    %c0_i32_0 = arith.constant 0 : i32
    %c0_i32_1 = arith.constant 0 : i32
    return %c0_i32, %c0_i32_0 : i32, i32
  }
  func.func @transform_6(%arg0: i32) -> (i32, i32) {
    %c0_i32 = arith.constant 0 : i32
    %c0_i32_0 = arith.constant 0 : i32
    %c0_i32_1 = arith.constant 0 : i32
    return %c0_i32, %c0_i32_0 : i32, i32
  }
  func.func @transform_7(%arg0: i32) -> (i32, i32) {
    %c0_i32 = arith.constant 0 : i32
    %c0_i32_0 = arith.constant 0 : i32
    %c0_i32_1 = arith.constant 0 : i32
    return %c0_i32, %c0_i32_0 : i32, i32
  }
  func.func @transform_8(%arg0: i32) -> (i32, i32) {
    %c0_i32 = arith.constant 0 : i32
    %c0_i32_0 = arith.constant 0 : i32
    %c0_i32_1 = arith.constant 0 : i32
    return %c0_i32, %c0_i32_0 : i32, i32
  }
  func.func @transform_9(%arg0: i32) -> (i32, i32) {
    %c0_i32 = arith.constant 0 : i32
    %c0_i32_0 = arith.constant 0 : i32
    return %arg0, %c0_i32 : i32, i32
  }
}

</mosaic_0001>

<bundles_post_ra>
// kernel: block_model_forward.1
= control target key start
LH: loop header
LB: loop body
LE: loop exit
PB: predicated region body
PF: predicated region fallthrough
CT: control target
= control target key end

     0   :  { %14 = vsyncpa [#allocation3], 0  ;;  %s999_s0 = inlined_call_operand.vmem [shape: bf16[8,128], index: 0, kind: input, shape index: {}]   ;;  %s1000_s1 = inlined_call_operand.hbm [shape: bf16[128,128], index: 1, kind: input, shape index: {}]   ;;  %s1001_s2 = inlined_call_operand.vmem [shape: f32[1,128], index: 2, kind: input, shape index: {}]   ;;  %s1002_s3 = inlined_call_operand.hbm [shape: bf16[128,128], index: 3, kind: input, shape index: {}]   ;;  %s1003_s4 = inlined_call_operand.vmem [shape: f32[1,128], index: 4, kind: input, shape index: {}]   ;;  %s1004_s5 = inlined_call_operand.hbm [shape: bf16[128,128], index: 5, kind: input, shape index: {}]   ;;  %s1005_s6 = inlined_call_operand.vmem [shape: f32[1,128], index: 6, kind: input, shape index: {}]   ;;  %s1006_s7 = inlined_call_operand.hbm [shape: bf16[128,128], index: 7, kind: input, shape index: {}]   ;;  %s1007_s8 = inlined_call_operand.vmem [shape: f32[1,128], index: 8, kind: input, shape index: {}]   ;;  %s1008_s9 = inlined_call_operand.hbm [shape: f32[8,128], index: 9, kind: output, shape index: {}]  }
   0x1   :  { %15 = vsyncpa [#allocation6], 0 }
   0x2   :  { %16 = vsyncpa [#allocation9], 0 }
   0x3   :  { %17 = vsyncpa [#allocation4], 0  ;;  %s858_s30 = smov [#allocation5]   ;;  %s859_s11 = smov [#allocation2]  }
   0x4   :  { %s39_s10 = sshll.u32 %s858_s30, 4  ;;  %s25_s12 = sshll.u32 %s859_s11, 4  ;;  %s40_s10 = int_to_ptr.vmem [resolvable:$true] %s39_s10  ;;  %s26_s12 = int_to_ptr.vmem [resolvable:$true] %s25_s12 }
   0x5   :  { %s758_s13 = scalar_lea.vmem %s40_s10, 1024  ;;  %p763_p1 = scmp.lt.s32.totalorder %s40_s10, %s40_s10 }
   0x6   :  { %p759_p0 = scmp.ne.s32.totalorder %s40_s10, %s758_s13  ;;  %p764_p2 = scmp.lt.s32.totalorder %s758_s13, %s758_s13 }
   0x8   :  { %p765_p3 = por %p764_p2, %p763_p1 }
   0xa   :  { %p766_p4 = pnand %p765_p3, %p759_p0 }
   0xc   :  { %769 = shalt.err (!%p766_p4)
}
   0xd   :  { %s860_s14 = smov 64   ;;  %s861_s15 = smov 4  }
   0xe   :  { %45 = dma.hbm_to_vmem [thread:$0]  %s1002_s3, 1024, %s40_s10, [#allocation6], %s860_s14, %s860_s14, %s861_s15  }
   0xf   :  { %s778_s18 = scalar_lea.vmem %s26_s12, 1024  ;;  %p783_p6 = scmp.lt.s32.totalorder %s26_s12, %s26_s12 }
  0x10   :  { %p779_p5 = scmp.ne.s32.totalorder %s26_s12, %s778_s18  ;;  %p784_p7 = scmp.lt.s32.totalorder %s778_s18, %s778_s18 }
  0x12   :  { %p785_p8 = por %p784_p7, %p783_p6 }
  0x14   :  { %p786_p9 = pnand %p785_p8, %p779_p5 }
  0x16   :  { %789 = shalt.err (!%p786_p9)
}
  0x17   :  { %31 = dma.hbm_to_vmem [thread:$0]  %s1000_s1, 1024, %s26_s12, [#allocation3], %s860_s14, %s860_s14, %s861_s15  }
  0x18   :  { %s862_s21 = smov [#allocation7]   ;;  %s863_s23 = smov [#allocation8]  }
  0x19   :  { %s53_s22 = sshll.u32 %s862_s21, 4  ;;  %s67_s24 = sshll.u32 %s863_s23, 4  ;;  %s54_s22 = int_to_ptr.vmem [resolvable:$true] %s53_s22  ;;  %s68_s24 = int_to_ptr.vmem [resolvable:$true] %s67_s24 }
  0x1a   :  { %s798_s3 = scalar_lea.vmem %s54_s22, 1024  ;;  %p803_p11 = scmp.lt.s32.totalorder %s54_s22, %s54_s22 }
  0x1b   :  { %p799_p10 = scmp.ne.s32.totalorder %s54_s22, %s798_s3  ;;  %p804_p12 = scmp.lt.s32.totalorder %s798_s3, %s798_s3 }
  0x1d   :  { %p805_p13 = por %p804_p12, %p803_p11 }
  0x1f   :  { %p806_p0 = pnand %p805_p13, %p799_p10 }
  0x21   :  { %809 = shalt.err (!%p806_p0)
}
  0x22   :  { %59 = dma.hbm_to_vmem [thread:$0]  %s1004_s5, 1024, %s54_s22, [#allocation6], %s860_s14, %s860_s14, %s861_s15  }
  0x23   :  { %s818_s1 = scalar_lea.vmem %s68_s24, 1024  ;;  %p823_p2 = scmp.lt.s32.totalorder %s68_s24, %s68_s24 }
  0x24   :  { %p819_p1 = scmp.ne.s32.totalorder %s68_s24, %s818_s1  ;;  %p824_p3 = scmp.lt.s32.totalorder %s818_s1, %s818_s1 }
  0x26   :  { %p825_p4 = por %p824_p3, %p823_p2 }
  0x28   :  { %p826_p5 = pnand %p825_p4, %p819_p1 }
  0x2a   :  { %829 = shalt.err (!%p826_p5)
}
  0x2b   :  { %73 = dma.hbm_to_vmem [thread:$0]  %s1006_s7, 1024, %s68_s24, [#allocation9], %s860_s14, %s860_s14, %s861_s15  }
  0x2c   :  { %850 = dma.done.wait [#allocation3], 1024  }
  0x2d   :  { %851 = vsyncadd [#allocation3], 4294966272 }
  0x2e   :  { %852 = dma.done.wait [#allocation6], 2048  }
  0x2f   :  { %853 = vsyncadd [#allocation6], 4294965248 }
  0x30   :  { %854 = dma.done.wait [#allocation9], 1024  }
  0x31   :  { %855 = vsyncadd [#allocation9], 4294966272  ;;  %v864_v0 = vmov 0.0   ;;  %vm865_vm0 = vmmov 0   ;;  %v718_v1 = vld [vmem:[#allocation2 + $0x38] sm:$0xff]   ;;  %v719_v2 = vld [vmem:[#allocation2 + $0x30] sm:$0xff]  }
  0x32   :  { %629 = vmatprep.subr.bf16.mxu0 %v864_v0  ;;  %645 = vmatprep.mubr.msk.bf16.mxu0 %vm865_vm0, %v864_v0  ;;  %v720_v3 = vld [vmem:[#allocation2 + $0x28] sm:$0xff]   ;;  %v726_v4 = vld [vmem:[#allocation5 + $0x38] sm:$0xff]   ;;  %v721_v5 = vld [vmem:[#allocation2 + $0x20] sm:$0xff]   ;;  %s866_s13 = smov [#allocation10]  }
  0x33   :  { %649 = vmatprep.subr.bf16.mxu1 %v864_v0  ;;  %665 = vmatprep.mubr.msk.bf16.mxu1 %vm865_vm0, %v864_v0  ;;  %v727_v6 = vld [vmem:[#allocation5 + $0x30] sm:$0xff]   ;;  %v722_v7 = vld [vmem:[#allocation2 + $0x18] sm:$0xff]   ;;  %v728_v8 = vld [vmem:[#allocation5 + $0x28] sm:$0xff]   ;;  %s546_s14 = sshll.u32 %s866_s13, 4  ;;  %s547_s14 = int_to_ptr.vmem [resolvable:$true] %s546_s14 }
  0x34   :  { %630 = vmatpush3.bf16.msra.mxu0 %v718_v1  ;;  %650 = vmatpush3.bf16.msra.mxu1 %v726_v4  ;;  %v723_v9 = vld [vmem:[#allocation2 + $0x10] sm:$0xff]   ;;  %v729_v10 = vld [vmem:[#allocation5 + $0x20] sm:$0xff]   ;;  %v724_v11 = vld [vmem:[#allocation2 + $0x8] sm:$0xff]   ;;  %p835_p7 = scmp.lt.s32.totalorder %s547_s14, %s547_s14 }
  0x35   :  { %631 = vmatprep.subr.bf16.mxu0 %v864_v0  ;;  %651 = vmatprep.subr.bf16.mxu1 %v864_v0  ;;  %v730_v12 = vld [vmem:[#allocation5 + $0x18] sm:$0xff]   ;;  %v725_v13 = vld [vmem:[#allocation2] sm:$0xff]   ;;  %v731_v14 = vld [vmem:[#allocation5 + $0x10] sm:$0xff]  }
  0x36   :  { %v89_v15 = vld [vmem:[%s999_s0] sm:$0xf]  ;;  %v732_v16 = vld [vmem:[#allocation5 + $0x8] sm:$0xff]   ;;  %v734_v18 = vld [vmem:[#allocation7 + $0x38] sm:$0xff]  }
  0x37   :  { %v733_v17 = vld [vmem:[#allocation5] sm:$0xff]   ;;  %v735_v19 = vld [vmem:[#allocation7 + $0x30] sm:$0xff]   ;;  %v736_v20 = vld [vmem:[#allocation7 + $0x28] sm:$0xff]  }
  0x38   :  { %632 = vmatpush3.bf16.msra.mxu0 %v719_v2  ;;  %652 = vmatpush3.bf16.msra.mxu1 %v727_v6  ;;  %v737_v21 = vld [vmem:[#allocation7 + $0x20] sm:$0xff]   ;;  %v738_v22 = vld [vmem:[#allocation7 + $0x18] sm:$0xff]   ;;  %v739_v23 = vld [vmem:[#allocation7 + $0x10] sm:$0xff]  }
  0x39   :  { %633 = vmatprep.subr.bf16.mxu0 %v864_v0  ;;  %653 = vmatprep.subr.bf16.mxu1 %v864_v0  ;;  %v557_v24 = vld [vmem:[%s1001_s2] ss:$0 sm:$0xff]  ;;  %v740_v32 = vld [vmem:[#allocation7 + $0x8] sm:$0xff]   ;;  %v742_v34 = vld [vmem:[#allocation8 + $0x38] sm:$0xff]  }
  0x3a   :  { %v741_v33 = vld [vmem:[#allocation7] sm:$0xff]   ;;  %v743_v35 = vld [vmem:[#allocation8 + $0x30] sm:$0xff]   ;;  %v744_v36 = vld [vmem:[#allocation8 + $0x28] sm:$0xff]  }
  0x3b   :  { %v745_v37 = vld [vmem:[#allocation8 + $0x20] sm:$0xff]   ;;  %v746_v38 = vld [vmem:[#allocation8 + $0x18] sm:$0xff]   ;;  %v747_v39 = vld [vmem:[#allocation8 + $0x10] sm:$0xff]  }
  0x3c   :  { %634 = vmatpush3.bf16.msra.mxu0 %v720_v3  ;;  %654 = vmatpush3.bf16.msra.mxu1 %v728_v8  ;;  %v748_v40 = vld [vmem:[#allocation8 + $0x8] sm:$0xff]   ;;  %v566_v41 = vld [vmem:[%s1003_s4] ss:$0 sm:$0xff] }
  0x3d   :  { %635 = vmatprep.subr.bf16.mxu0 %v864_v0  ;;  %655 = vmatprep.subr.bf16.mxu1 %v864_v0  ;;  %v749_v49 = vld [vmem:[#allocation8] sm:$0xff]  }
  0x3e   :  { %v575_v50 = vld [vmem:[%s1005_s6] ss:$0 sm:$0xff]  ;;  %s830_s6 = scalar_lea.vmem %s547_s14, 128 }
  0x3f   :  { %v584_v57 = vld [vmem:[%s1007_s8] ss:$0 sm:$0xff]  ;;  %p831_p6 = scmp.ne.s32.totalorder %s547_s14, %s830_s6  ;;  %p836_p8 = scmp.lt.s32.totalorder %s830_s6, %s830_s6 }
  0x40   :  { %636 = vmatpush3.bf16.msra.mxu0 %v721_v5  ;;  %656 = vmatpush3.bf16.msra.mxu1 %v729_v10 }
  0x41   :  { %637 = vmatprep.subr.bf16.mxu0 %v864_v0  ;;  %657 = vmatprep.subr.bf16.mxu1 %v864_v0  ;;  %p837_p9 = por %p836_p8, %p835_p7 }
  0x43   :  { %p838_p10 = pnand %p837_p9, %p831_p6 }
  0x44   :  { %638 = vmatpush3.bf16.msra.mxu0 %v722_v7  ;;  %658 = vmatpush3.bf16.msra.mxu1 %v730_v12 }
  0x45   :  { %639 = vmatprep.subr.bf16.mxu0 %v864_v0  ;;  %659 = vmatprep.subr.bf16.mxu1 %v864_v0 }
  0x48   :  { %640 = vmatpush3.bf16.msra.mxu0 %v723_v9  ;;  %660 = vmatpush3.bf16.msra.mxu1 %v731_v14 }
  0x49   :  { %641 = vmatprep.subr.bf16.mxu0 %v864_v0  ;;  %661 = vmatprep.subr.bf16.mxu1 %v864_v0 }
  0x4c   :  { %642 = vmatpush3.bf16.msra.mxu0 %v724_v11  ;;  %662 = vmatpush3.bf16.msra.mxu1 %v732_v16 }
  0x4d   :  { %643 = vmatprep.subr.bf16.mxu0 %v864_v0  ;;  %663 = vmatprep.subr.bf16.mxu1 %v864_v0 }
  0x50   :  { %644 = vmatpush3.bf16.msra.mxu0 %v725_v13  ;;  %664 = vmatpush3.bf16.msra.mxu1 %v733_v17 }
  0x51   :  { %669 = vmatprep.subr.bf16.mxu0 %v864_v0  ;;  %689 = vmatprep.subr.bf16.mxu1 %v864_v0 }
  0x53   :  { %646 = vmatmul.mubr.bf16.vlgmr.msra.gmra.mxu0 %v89_v15 }
  0x54   :  { %685 = vmatprep.mubr.msk.bf16.mxu0 %vm865_vm0, %v864_v0  ;;  %670 = vmatpush3.bf16.msra.mxu0 %v734_v18 }
  0x55   :  { %671 = vmatprep.subr.bf16.mxu0 %v864_v0 }
  0x58   :  { %672 = vmatpush3.bf16.msra.mxu0 %v735_v19 }
  0x59   :  { %673 = vmatprep.subr.bf16.mxu0 %v864_v0 }
  0x5c   :  { %674 = vmatpush3.bf16.msra.mxu0 %v736_v20 }
  0x5d   :  { %675 = vmatprep.subr.bf16.mxu0 %v864_v0 }
  0x60   :  { %676 = vmatpush3.bf16.msra.mxu0 %v737_v21 }
  0x61   :  { %677 = vmatprep.subr.bf16.mxu0 %v864_v0 }
  0x64   :  { %678 = vmatpush3.bf16.msra.mxu0 %v738_v22 }
  0x65   :  { %679 = vmatprep.subr.bf16.mxu0 %v864_v0 }
  0x68   :  { %680 = vmatpush3.bf16.msra.mxu0 %v739_v23 }
  0x69   :  { %681 = vmatprep.subr.bf16.mxu0 %v864_v0 }
  0x6c   :  { %682 = vmatpush3.bf16.msra.mxu0 %v740_v32 }
  0x6d   :  { %683 = vmatprep.subr.bf16.mxu0 %v864_v0 }
  0x70   :  { %684 = vmatpush3.bf16.msra.mxu0 %v741_v33 }
 0x113   :  { %v195_v25 = vpop.f32.mrf.mxu0 }
 0x114   :  { %v196_v26 = vadd.f32 %v557_v24, %v195_v25 }
 0x115   :  { %v647_v27 = vpop.f32.mrf.mxu0 }
 0x116   :  { %v201_v28 = vmax.f32 %v196_v26, 0.0 }
 0x117   :  { %v198_v29 = vpop.f32.mrf.mxu0 }
 0x118   :  { %v202_v30 = vpack.c.bf16 %v201_v28, %v201_v28 }
 0x119   :  { %v648_v31 = vpop.f32.mrf.mxu0 }
 0x11a   :  { %666 = vmatmul.mubr.bf16.vlgmr.msra.gmra.mxu1 %v202_v30 }
 0x11b   :  { %705 = vmatprep.mubr.msk.bf16.mxu1 %vm865_vm0, %v864_v0  ;;  %690 = vmatpush3.bf16.msra.mxu1 %v742_v34 }
 0x11c   :  { %691 = vmatprep.subr.bf16.mxu1 %v864_v0 }
 0x11f   :  { %692 = vmatpush3.bf16.msra.mxu1 %v743_v35 }
 0x120   :  { %693 = vmatprep.subr.bf16.mxu1 %v864_v0 }
 0x123   :  { %694 = vmatpush3.bf16.msra.mxu1 %v744_v36 }
 0x124   :  { %695 = vmatprep.subr.bf16.mxu1 %v864_v0 }
 0x127   :  { %696 = vmatpush3.bf16.msra.mxu1 %v745_v37 }
 0x128   :  { %697 = vmatprep.subr.bf16.mxu1 %v864_v0 }
 0x12b   :  { %698 = vmatpush3.bf16.msra.mxu1 %v746_v38 }
 0x12c   :  { %699 = vmatprep.subr.bf16.mxu1 %v864_v0 }
 0x12f   :  { %700 = vmatpush3.bf16.msra.mxu1 %v747_v39 }
 0x130   :  { %701 = vmatprep.subr.bf16.mxu1 %v864_v0 }
 0x133   :  { %702 = vmatpush3.bf16.msra.mxu1 %v748_v40 }
 0x134   :  { %703 = vmatprep.subr.bf16.mxu1 %v864_v0 }
 0x137   :  { %704 = vmatpush3.bf16.msra.mxu1 %v749_v49 }
 0x1da   :  { %v308_v42 = vpop.f32.mrf.mxu1 }
 0x1db   :  { %v309_v43 = vadd.f32 %v566_v41, %v308_v42 }
 0x1dc   :  { %v667_v44 = vpop.f32.mrf.mxu1 }
 0x1dd   :  { %v314_v45 = vmax.f32 %v309_v43, 0.0 }
 0x1de   :  { %v311_v46 = vpop.f32.mrf.mxu1 }
 0x1df   :  { %v315_v47 = vpack.c.bf16 %v314_v45, %v314_v45 }
 0x1e0   :  { %v668_v48 = vpop.f32.mrf.mxu1 }
 0x1e1   :  { %686 = vmatmul.mubr.bf16.vlgmr.msra.gmra.mxu0 %v315_v47 }
 0x2a1   :  { %v421_v51 = vpop.f32.mrf.mxu0 }
 0x2a2   :  { %v422_v52 = vadd.f32 %v575_v50, %v421_v51 }
 0x2a3   :  { %v687_v53 = vpop.f32.mrf.mxu0 }
 0x2a4   :  { %v427_v54 = vpack.c.bf16 %v422_v52, %v422_v52 }
 0x2a5   :  { %v424_v55 = vpop.f32.mrf.mxu0 }
 0x2a6   :  { %706 = vmatmul.mubr.bf16.vlgmr.msra.gmra.mxu1 %v427_v54 }
 0x2a7   :  { %v688_v56 = vpop.f32.mrf.mxu0 }
 0x366   :  { %v533_v58 = vpop.f32.mrf.mxu1 }
 0x367   :  { %v534_v59 = vadd.f32 %v584_v57, %v533_v58 }
 0x368   :  { %v707_v60 = vpop.f32.mrf.mxu1 }
 0x369   :  { %539 = vst [vmem:[#allocation10] sm:$0xff] %v534_v59 }
 0x36a   :  { %v536_v61 = vpop.f32.mrf.mxu1 }
 0x36b   :  { %841 = shalt.err (!%p838_p10)
}
 0x36c   :  { %549 = dma.vmem_to_hbm [thread:$0]  %s547_s14, 128, %s1008_s9, [#allocation4]   ;;  %v708_v62 = vpop.f32.mrf.mxu1 }
 0x36d   :  { %856 = dma.done.wait [#allocation4], 128  }
 0x36e   :  { %857 = vsyncadd [#allocation4], 4294967168 }
 0x36f   :  { %553 = vsyncpa [#allocation3], 1 }
 0x370   :  { %554 = vsyncpa [#allocation6], 1 }
 0x371   :  { %555 = vsyncpa [#allocation9], 1 }
 0x372   :  { %556 = vsyncpa [#allocation4], 1 }

</bundles_post_ra>
